<compile_context>
chip_gen: v7x
topology: tpu7x:2x2x1
jax: 0.10.0
libtpu: 0.0.40
codegen_flags: <defaults>
</compile_context>

<pallas_src>
import jax
import jax.numpy as jnp
from jax.experimental import pallas as pl
from jax.experimental.pallas import tpu as pltpu


def mlp_kernel(xT_ref, w1_ref, b1_ref, w2_ref, b2_ref, w3_ref, b3_ref, oT_ref):
    """Fused 3-layer MLP in transposed layout: columns are batch examples."""
    x = xT_ref[...]                                                     # [F_in, tb]
    # Layer 1: relu(W1 @ x + b1)
    h1 = jnp.dot(w1_ref[...], x, preferred_element_type=jnp.float32)    # [H, tb]
    h1 = jnp.maximum(h1 + b1_ref[...], 0.0)
    # Layer 2: relu(W2 @ h1 + b2)
    h2 = jnp.dot(w2_ref[...], h1, preferred_element_type=jnp.float32)   # [H, tb]
    h2 = jnp.maximum(h2 + b2_ref[...], 0.0)
    # Layer 3: relu(W3 @ h2 + b3)
    h3 = jnp.dot(w3_ref[...], h2, preferred_element_type=jnp.float32)   # [F_out, tb]
    oT_ref[...] = jnp.maximum(h3 + b3_ref[...], 0.0).astype(oT_ref.dtype)


def blob_model_forward(x, params, *, tile_b=None):
    """x: [B, input_features] f32. params: PyTorch-layout w1,b1,w2,b2,w3,b3."""
    B, F_in = x.shape
    H = params["w1"].shape[0]
    F_out = params["w3"].shape[0]

    # Default: whole batch in a single grid step (fits VMEM thousands of
    # times over at these shapes).  Only tile when the caller asks for it.
    if tile_b is None or tile_b >= B:
        tile_b = B
    else:
        # Batch sits on the lane axis, so a partial tile must be a multiple
        # of 128 to satisfy the TPU (8, 128) block divisibility rule.
        assert tile_b % 128 == 0 and B % tile_b == 0, (
            "tile_b must be a multiple of 128 that divides B when tiling")

    grid = (B // tile_b,)
    const = lambda i: (0, 0)  # weights/biases: the same (only) block each step

    # Wrapper-side transpose: present batch on the lane axis to the kernel.
    xT = x.T  # [F_in, B]

    oT = pl.pallas_call(
        mlp_kernel,
        out_shape=jax.ShapeDtypeStruct((F_out, B), jnp.float32),
        grid=grid,
        in_specs=[
            pl.BlockSpec((F_in, tile_b), lambda i: (0, i)),  # x^T batch tile
            pl.BlockSpec((H, F_in), const),                  # w1  [out, in]
            pl.BlockSpec((H, 1), const),                     # b1  [out, 1]
            pl.BlockSpec((H, H), const),                     # w2
            pl.BlockSpec((H, 1), const),                     # b2
            pl.BlockSpec((F_out, H), const),                 # w3
            pl.BlockSpec((F_out, 1), const),                 # b3
        ],
        out_specs=pl.BlockSpec((F_out, tile_b), lambda i: (0, i)),
        compiler_params=pltpu.CompilerParams(
            # The batch grid axis (when used) is embarrassingly parallel; on
            # v7x the two TensorCores each take half the batch tiles.
            dimension_semantics=("parallel",),
        ),
    )(xT, params["w1"], params["b1"], params["w2"], params["b2"],
      params["w3"], params["b3"])

    return oT.T  # back to [B, F_out]


def init_params(key, input_features, output_features, hidden_units=16):
    """nn.Linear-style init (uniform +/- 1/sqrt(fan_in)), PyTorch [out, in] layout."""
    ks = jax.random.split(key, 6)

    def lin(kw, kb, fan_in, fan_out):
        bound = 1.0 / jnp.sqrt(float(fan_in))
        w = jax.random.uniform(kw, (fan_out, fan_in), jnp.float32, -bound, bound)
        b = jax.random.uniform(kb, (fan_out, 1), jnp.float32, -bound, bound)
        return w, b

    w1, b1 = lin(ks[0], ks[1], input_features, hidden_units)
    w2, b2 = lin(ks[2], ks[3], hidden_units, hidden_units)
    w3, b3 = lin(ks[4], ks[5], hidden_units, output_features)
    return dict(w1=w1, b1=b1, w2=w2, b2=b2, w3=w3, b3=b3)


def reference_forward(x, p):
    relu = lambda t: jnp.maximum(t, 0.0)
    h = relu(x @ p["w1"].T + p["b1"][:, 0])
    h = relu(h @ p["w2"].T + p["b2"][:, 0])
    return relu(h @ p["w3"].T + p["b3"][:, 0])


if __name__ == "__main__":
    key = jax.random.PRNGKey(0)
    k_x, k_p = jax.random.split(key)

    # BlobModel(input_features=8, output_features=4, hidden_units=16), batch=32.
    B, F_in, F_out, H = 32, 8, 4, 16

    x = jax.random.normal(k_x, (B, F_in), dtype=jnp.float32)
    params = init_params(k_p, F_in, F_out, H)

    out = blob_model_forward(x, params)       # single grid step: grid=(1,)
    out = jax.block_until_ready(out)

    ref = reference_forward(x, params)
    assert out.shape == (B, F_out)
    assert jnp.allclose(out, ref, atol=1e-5, rtol=1e-5), "mismatch vs reference"

    print("KERNEL_OK")
</pallas_src>

<mosaic_0001>
module attributes {stable_mosaic.version = 11 : i64} {
  func.func @mlp_kernel(%arg0: i32, %arg1: memref<8x32xf32, #tpu.memory_space<vmem>>, %arg2: memref<16x8xf32, #tpu.memory_space<vmem>>, %arg3: memref<16x1xf32, #tpu.memory_space<vmem>>, %arg4: memref<16x16xf32, #tpu.memory_space<vmem>>, %arg5: memref<16x1xf32, #tpu.memory_space<vmem>>, %arg6: memref<4x16xf32, #tpu.memory_space<vmem>>, %arg7: memref<4x1xf32, #tpu.memory_space<vmem>>, %arg8: memref<4x32xf32, #tpu.memory_space<vmem>>) attributes {dimension_semantics = [#tpu.dimension_semantics<parallel>], iteration_bounds = array<i64: 1>, scalar_prefetch = 0 : i64, scratch_operands = 0 : i64, tpu.core_type = #tpu.core_type<tc>, window_params = [{transform_indices = @transform_0, window_bounds = array<i64: 8, 32>}, {pipeline_mode = #tpu.pipeline_mode<synchronous>, transform_indices = @transform_1, window_bounds = array<i64: 16, 8>}, {pipeline_mode = #tpu.pipeline_mode<synchronous>, transform_indices = @transform_2, window_bounds = array<i64: 16, 1>}, {pipeline_mode = #tpu.pipeline_mode<synchronous>, transform_indices = @transform_3, window_bounds = array<i64: 16, 16>}, {pipeline_mode = #tpu.pipeline_mode<synchronous>, transform_indices = @transform_4, window_bounds = array<i64: 16, 1>}, {pipeline_mode = #tpu.pipeline_mode<synchronous>, transform_indices = @transform_5, window_bounds = array<i64: 4, 16>}, {pipeline_mode = #tpu.pipeline_mode<synchronous>, transform_indices = @transform_6, window_bounds = array<i64: 4, 1>}, {transform_indices = @transform_7, window_bounds = array<i64: 4, 32>}]} {
    %c0 = arith.constant 0 : index
    %c0_0 = arith.constant 0 : index
    %0 = vector.load %arg1[%c0, %c0_0] : memref<8x32xf32, #tpu.memory_space<vmem>>, vector<8x32xf32>
    %c0_1 = arith.constant 0 : index
    %c0_2 = arith.constant 0 : index
    %1 = vector.load %arg2[%c0_1, %c0_2] : memref<16x8xf32, #tpu.memory_space<vmem>>, vector<16x8xf32>
    %cst = arith.constant dense<0.000000e+00> : vector<16x32xf32>
    %2 = tpu.matmul %1, %0, %cst {dimension_numbers = #tpu.dot_dimension_numbers<[1], [0], [0], [1], [0, 0, 1, 1], [], []>} : vector<16x8xf32>, vector<8x32xf32>, vector<16x32xf32> -> vector<16x32xf32>
    %c0_3 = arith.constant 0 : index
    %c0_4 = arith.constant 0 : index
    %3 = vector.load %arg3[%c0_3, %c0_4] : memref<16x1xf32, #tpu.memory_space<vmem>>, vector<16x1xf32>
    %4 = vector.broadcast %3 : vector<16x1xf32> to vector<16x32xf32>
    %5 = arith.addf %2, %4 : vector<16x32xf32>
    %cst_5 = arith.constant 0.000000e+00 : f32
    %6 = vector.broadcast %cst_5 : f32 to vector<16x32xf32>
    %7 = arith.maximumf %5, %6 : vector<16x32xf32>
    %c0_6 = arith.constant 0 : index
    %c0_7 = arith.constant 0 : index
    %8 = vector.load %arg4[%c0_6, %c0_7] : memref<16x16xf32, #tpu.memory_space<vmem>>, vector<16x16xf32>
    %cst_8 = arith.constant dense<0.000000e+00> : vector<16x32xf32>
    %9 = tpu.matmul %8, %7, %cst_8 {dimension_numbers = #tpu.dot_dimension_numbers<[1], [0], [0], [1], [0, 0, 1, 1], [], []>} : vector<16x16xf32>, vector<16x32xf32>, vector<16x32xf32> -> vector<16x32xf32>
    %c0_9 = arith.constant 0 : index
    %c0_10 = arith.constant 0 : index
    %10 = vector.load %arg5[%c0_9, %c0_10] : memref<16x1xf32, #tpu.memory_space<vmem>>, vector<16x1xf32>
    %11 = vector.broadcast %10 : vector<16x1xf32> to vector<16x32xf32>
    %12 = arith.addf %9, %11 : vector<16x32xf32>
    %cst_11 = arith.constant 0.000000e+00 : f32
    %13 = vector.broadcast %cst_11 : f32 to vector<16x32xf32>
    %14 = arith.maximumf %12, %13 : vector<16x32xf32>
    %c0_12 = arith.constant 0 : index
    %c0_13 = arith.constant 0 : index
    %15 = vector.load %arg6[%c0_12, %c0_13] : memref<4x16xf32, #tpu.memory_space<vmem>>, vector<4x16xf32>
    %cst_14 = arith.constant dense<0.000000e+00> : vector<4x32xf32>
    %16 = tpu.matmul %15, %14, %cst_14 {dimension_numbers = #tpu.dot_dimension_numbers<[1], [0], [0], [1], [0, 0, 1, 1], [], []>} : vector<4x16xf32>, vector<16x32xf32>, vector<4x32xf32> -> vector<4x32xf32>
    %c0_15 = arith.constant 0 : index
    %c0_16 = arith.constant 0 : index
    %17 = vector.load %arg7[%c0_15, %c0_16] : memref<4x1xf32, #tpu.memory_space<vmem>>, vector<4x1xf32>
    %18 = vector.broadcast %17 : vector<4x1xf32> to vector<4x32xf32>
    %19 = arith.addf %16, %18 : vector<4x32xf32>
    %cst_17 = arith.constant 0.000000e+00 : f32
    %20 = vector.broadcast %cst_17 : f32 to vector<4x32xf32>
    %21 = arith.maximumf %19, %20 : vector<4x32xf32>
    %c0_18 = arith.constant 0 : index
    %c0_19 = arith.constant 0 : index
    %22 = vector.load %arg8[%c0_18, %c0_19] : memref<4x32xf32, #tpu.memory_space<vmem>>, vector<4x32xf32>
    tpu.vector_store %arg8[%c0_18, %c0_19], %21 {strides = array<i32>} : memref<4x32xf32, #tpu.memory_space<vmem>>, vector<4x32xf32>,
    return
  }
  func.func @transform_0(%arg0: i32) -> (i32, i32) {
    %c0_i32 = arith.constant 0 : i32
    %c0_i32_0 = arith.constant 0 : i32
    return %c0_i32, %arg0 : i32, i32
  }
  func.func @transform_1(%arg0: i32) -> (i32, i32) {
    %c0_i32 = arith.constant 0 : i32
    %c0_i32_0 = arith.constant 0 : i32
    %c0_i32_1 = arith.constant 0 : i32
    return %c0_i32, %c0_i32_0 : i32, i32
  }
  func.func @transform_2(%arg0: i32) -> (i32, i32) {
    %c0_i32 = arith.constant 0 : i32
    %c0_i32_0 = arith.constant 0 : i32
    %c0_i32_1 = arith.constant 0 : i32
    return %c0_i32, %c0_i32_0 : i32, i32
  }
  func.func @transform_3(%arg0: i32) -> (i32, i32) {
    %c0_i32 = arith.constant 0 : i32
    %c0_i32_0 = arith.constant 0 : i32
    %c0_i32_1 = arith.constant 0 : i32
    return %c0_i32, %c0_i32_0 : i32, i32
  }
  func.func @transform_4(%arg0: i32) -> (i32, i32) {
    %c0_i32 = arith.constant 0 : i32
    %c0_i32_0 = arith.constant 0 : i32
    %c0_i32_1 = arith.constant 0 : i32
    return %c0_i32, %c0_i32_0 : i32, i32
  }
  func.func @transform_5(%arg0: i32) -> (i32, i32) {
    %c0_i32 = arith.constant 0 : i32
    %c0_i32_0 = arith.constant 0 : i32
    %c0_i32_1 = arith.constant 0 : i32
    return %c0_i32, %c0_i32_0 : i32, i32
  }
  func.func @transform_6(%arg0: i32) -> (i32, i32) {
    %c0_i32 = arith.constant 0 : i32
    %c0_i32_0 = arith.constant 0 : i32
    %c0_i32_1 = arith.constant 0 : i32
    return %c0_i32, %c0_i32_0 : i32, i32
  }
  func.func @transform_7(%arg0: i32) -> (i32, i32) {
    %c0_i32 = arith.constant 0 : i32
    %c0_i32_0 = arith.constant 0 : i32
    return %c0_i32, %arg0 : i32, i32
  }
}

</mosaic_0001>

<bundles_post_ra>
// kernel: tpu_custom_call.1
= control target key start
LH: loop header
LB: loop body
LE: loop exit
PB: predicated region body
PF: predicated region fallthrough
CT: control target
= control target key end

     0   :  { %vm42_vm0 = vcmask 64512   ;;  %v393_v4 = vmov 0   ;;  %s486_s0 = inlined_call_operand.vmem [shape: f32[8,32], index: 0, kind: input, shape index: {}]   ;;  %s487_s1 = inlined_call_operand.vmem [shape: f32[16,8], index: 1, kind: input, shape index: {}]   ;;  %s488_s2 = inlined_call_operand.vmem [shape: f32[16,1], index: 2, kind: input, shape index: {}]   ;;  %s489_s3 = inlined_call_operand.vmem [shape: f32[16,16], index: 3, kind: input, shape index: {}]   ;;  %s490_s4 = inlined_call_operand.vmem [shape: f32[16,1], index: 4, kind: input, shape index: {}]   ;;  %s491_s5 = inlined_call_operand.vmem [shape: f32[4,16], index: 5, kind: input, shape index: {}]   ;;  %s492_s6 = inlined_call_operand.vmem [shape: f32[4,1], index: 6, kind: input, shape index: {}]   ;;  %s493_s7 = inlined_call_operand.hbm [shape: f32[4,32], index: 7, kind: output, shape index: {}]  }
   0x1   :  { %v27_v0 = vld [vmem:[%s486_s0] sm:$0xff]  ;;  %v29_v2 = vld [vmem:[%s487_s1 + $0x8] sm:$0xff]  ;;  %367 = vset.pattern.permute.xlu0 %v393_v4 }
   0x2   :  { %v28_v1 = vld [vmem:[%s487_s1] sm:$0xff]  ;;  %336 = vmatprep.subr.mxu0 %v27_v0 }
   0x3   :  { %338 = vmatprep.mubr.msk.f32.mxu0 %vm42_vm0, %v28_v1  ;;  %v30_v3 = vld [vmem:[%s488_s2] sm:$0xff]  ;;  %337 = vmatpush3.msra.mxu0 %v27_v0 }
   0x4   :  { %12 = vsyncpa [#allocation3], 0  ;;  %339 = vmatmul.mubr.msk.f32.vlgmr.msra.gmra.mrb[0].mxu0 %vm42_vm0, %v29_v2  ;;  %34 = vperm.xlu0 %367, %v30_v3   ;;  %v31_v5 = vld [vmem:[%s488_s2 + $0x8] sm:$0xff]  ;;  %v225_v6 = vld [vmem:[%s492_s6] sm:$0xf]  ;;  %vm140_vm1 = vcmask 130048  }
   0x5   :  { %368 = vset.pattern.permute.xlu1 %v393_v4  ;;  %v126_v7 = vld [vmem:[%s489_s3] sm:$0xff]  ;;  %v129_v9 = vld [vmem:[%s490_s4 + $0x8] sm:$0xff]  ;;  %v394_v20 = vmov 0.0|0.0   ;;  %vm395_vm2 = vmmov 0   ;;  %v396_v21 = vmov 0.0   ;;  %vm305_vm3 = vcmask 257024  }
   0x6   :  { %345 = vmatprep.mubr.msk.f32.mxu1 %vm140_vm1, %v126_v7  ;;  %v128_v8 = vld [vmem:[%s490_s4] sm:$0xff]  ;;  %v127_v19 = vld [vmem:[%s489_s3 + $0x8] sm:$0xff]  ;;  %359 = vmatprep.subr.bf16.mxu0 %v394_v20  ;;  %s397_s3 = smov [#allocation2]  }
   0x7   :  { %132 = vperm.xlu1 %368, %v128_v8   ;;  %352 = vmatprep.mubr.msk.f32.mxu0 %vm395_vm2, %v396_v21  ;;  %v224_v31 = vld [vmem:[%s491_s5] sm:$0xf]  ;;  %s313_s18 = sshll.u32 %s397_s3, 4  ;;  %s314_s18 = int_to_ptr.vmem [resolvable:$true] %s313_s18 }
   0x8   :  { %39 = vperm.xlu0 %367, %v31_v5   ;;  %s369_s19 = scalar_lea.vmem %s314_s18, 64  ;;  %p374_p1 = scmp.lt.s32.totalorder %s314_s18, %s314_s18 }
   0x9   :  { %p370_p0 = scmp.ne.s32.totalorder %s314_s18, %s369_s19  ;;  %p375_p2 = scmp.lt.s32.totalorder %s369_s19, %s369_s19 }
   0xb   :  { %137 = vperm.xlu1 %368, %v129_v9   ;;  %p376_p3 = por %p375_p2, %p374_p1 }
   0xc   :  { %228 = vperm.xlu0 %367, %v225_v6  }
   0xd   :  { %p377_p4 = pnand %p376_p3, %p370_p0 }
  0x83   :  { %v35_v10 = vpop.permute.xlu0 %34 }
  0x86   :  { %v133_v22 = vpop.permute.xlu1 %132 }
  0x87   :  { %v40_v11 = vpop.permute.xlu0 %39 }
  0x8a   :  { %v138_v23 = vpop.permute.xlu1 %137 }
  0x8b   :  { %v229_v32 = vpop.permute.xlu0 %228 }
  0xd7   :  { %v340_v12 = vpop.f32.mrb[0].mxu0 }
  0xd8   :  { %v121_v13 = vadd.f32 %v340_v12, %v40_v11  ;;  %v115_v14 = vpop.f32.mrb[1].mxu0 }
  0xd9   :  { %v116_v15 = vadd.f32 %v115_v14, %v35_v10 }
  0xda   :  { %v125_v16 = vmax.f32 %v121_v13, 0.0 }
  0xdb   :  { %v124_v17 = vmax.f32 %v116_v15, 0.0 }
  0xdd   :  { %v355_v18 = vpack.c.bf16 %v125_v16, %v124_v17 }
  0xdf   :  { %356 = vmatprep.subr.bf16.mxu1 %v355_v18 }
  0xe0   :  { %358 = vmatpush3.bf16.msra.mxu1 %v355_v18 }
  0xe3   :  { %346 = vmatmul.mubr.msk.f32.vlgmr.msra.gmra.mrb[0].mxu1 %vm140_vm1, %v127_v19 }
 0x1b6   :  { %v347_v24 = vpop.f32.mrb[0].mxu1 }
 0x1b7   :  { %v219_v25 = vadd.f32 %v347_v24, %v138_v23  ;;  %v213_v26 = vpop.f32.mrb[1].mxu1 }
 0x1b8   :  { %v214_v27 = vadd.f32 %v213_v26, %v133_v22 }
 0x1b9   :  { %v223_v28 = vmax.f32 %v219_v25, 0.0 }
 0x1ba   :  { %v222_v29 = vmax.f32 %v214_v27, 0.0 }
 0x1bc   :  { %v360_v30 = vpack.c.bf16 %v223_v28, %v222_v29 }
 0x1be   :  { %361 = vmatpush3.bf16.msra.mxu0 %v360_v30 }
 0x1c1   :  { %353 = vmatmul.mubr.msk.f32.vlgmr.msra.gmra.mrb[2].mxu0 %vm140_vm1, %v224_v31 }
 0x294   :  { %v300_v33 = vpop.f32.mrb[2].mxu0 }
 0x295   :  { %v301_v34 = vadd.f32 %v300_v33, %v229_v32  ;;  %v354_v35 = vpop.f32.mrb[3].mxu0 }
 0x297   :  { %v304_v36 = vmax.f32 %v301_v34, 0.0 }
 0x299   :  { %306 = vst.msk [vmem:[#allocation2] sm:$0xf] %vm305_vm3, %v304_v36 }
 0x29a   :  { %380 = shalt.err (!%p377_p4)
}
 0x29b   :  { %s381_s21 = scalar_lea.hbm %s493_s7, 64 }
 0x29c   :  { %p382_p5 = scmp.ne.s32.totalorder %s493_s7, %s381_s21  ;;  %p385_p6 = scmp.lt.u32.totalorder %s381_s21, %s493_s7 }
 0x29e   :  { %p387_p7 = pnand %p385_p6, %p382_p5 }
 0x2a0   :  { %390 = shalt.err (!%p387_p7)
}
 0x2a1   :  { %316 = dma.vmem_to_hbm [thread:$0]  %s314_s18, 64, %s493_s7, [#allocation3]  }
 0x2a2   :  { %391 = dma.done.wait [#allocation3], 64  }
 0x2a3   :  { %392 = vsyncadd [#allocation3], 4294967232 }
 0x2a4   :  { %320 = vsyncpa [#allocation3], 1 }

</bundles_post_ra>
